<compile_context>
chip_gen: v7x
topology: tpu7x:2x2x1
jax: 0.10.0
libtpu: 0.0.40
codegen_flags: <defaults>
</compile_context>

<pallas_src>
import functools

import jax
import jax.numpy as jnp
from jax.experimental import pallas as pl
from jax.experimental.pallas import tpu as pltpu


def _mlp_kernel(x_ref, win_t_ref, bin_ref, wout_t_ref, bout_ref, o_ref,
                *, act_type, use_bf16):
    f32 = jnp.float32
    x = x_ref[...]                       # (TR, D): row tile of flattened (B*P, D) input
    w_in = win_t_ref[...]                # (D, M)  == W_in.T (pre-transposed in wrapper)
    w_out = wout_t_ref[...]              # (M, D)  == W_out.T

    if use_bf16:
        x_mm, w_in_mm = x.astype(jnp.bfloat16), w_in.astype(jnp.bfloat16)
    else:
        x_mm, w_in_mm = x, w_in

    # pre = x @ W_in.T + b_in   — one full-width MXU pass for all rows in the tile
    pre = jnp.dot(x_mm, w_in_mm, preferred_element_type=f32) + bin_ref[...]

    # Activation (element-wise, kept in f32 — v5e has no bf16 VPU/EUP path anyway).
    if act_type == 'ReLU':
        post = jnp.maximum(pre, 0.0)
    else:  # 'GeLU' — exact (erf) GeLU, matching torch.nn.functional.gelu default
        post = jax.nn.gelu(pre, approximate=False)

    if use_bf16:
        post_mm, w_out_mm = post.astype(jnp.bfloat16), w_out.astype(jnp.bfloat16)
    else:
        post_mm, w_out_mm = post, w_out

    # out = post @ W_out.T + b_out
    o_ref[...] = (jnp.dot(post_mm, w_out_mm, preferred_element_type=f32)
                  + bout_ref[...]).astype(o_ref.dtype)


def _pick_row_tile(n):
    """Largest row tile (multiple of 8, <= 512) dividing n; else the full extent."""
    if n % 8 != 0:
        return n
    for cand in (512, 256, 128, 64, 32, 16, 8):
        if n % cand == 0:
            return cand
    return n


def mlp_forward(x, W_in, b_in, W_out, b_out, *, act_type='ReLU', use_bf16=False):
    """Pallas TPU forward of the MLP module.

    x: (B, P, D); W_in: (M, D); b_in: (M,); W_out: (D, M); b_out: (D,) -> (B, P, D)
    """
    assert act_type in ('ReLU', 'GeLU')
    B, P, D = x.shape
    M = W_in.shape[0]
    N = B * P
    x2 = x.reshape(N, D)

    # Pre-transpose weights once (wrapper-side, one-time) so both in-kernel
    # matmuls are plain (rows, K) @ (K, cols) — no XLU transpose inside the loop.
    W_in_T = W_in.T            # (D, M)
    W_out_T = W_out.T          # (M, D)
    b_in2 = b_in.reshape(1, M)
    b_out2 = b_out.reshape(1, D)

    TR = _pick_row_tile(N)
    grid = (N // TR,)

    kernel = functools.partial(_mlp_kernel, act_type=act_type, use_bf16=use_bf16)
    const = lambda i: (0, 0)   # weights / biases: same whole-array block every step

    out2 = pl.pallas_call(
        kernel,
        out_shape=jax.ShapeDtypeStruct((N, D), jnp.float32),
        grid_spec=pltpu.PrefetchScalarGridSpec(
            num_scalar_prefetch=0,
            grid=grid,
            in_specs=[
                pl.BlockSpec((TR, D), lambda i: (i, 0)),   # activation row tile
                pl.BlockSpec((D, M), const),               # W_in.T
                pl.BlockSpec((1, M), const),               # b_in
                pl.BlockSpec((M, D), const),               # W_out.T
                pl.BlockSpec((1, D), const),               # b_out
            ],
            out_specs=pl.BlockSpec((TR, D), lambda i: (i, 0)),
        ),
        compiler_params=pltpu.CompilerParams(
            # Row tiles are independent -> shard across v7x's 2 TensorCores.
            dimension_semantics=("parallel",),
        ),
    )(x2, W_in_T, b_in2, W_out_T, b_out2)
    return out2.reshape(B, P, D)


def reference_mlp(x, W_in, b_in, W_out, b_out, act_type='ReLU'):
    """Pure-JAX transcription of the PyTorch MLP.forward, for validation."""
    pre = jnp.einsum('md,bpd->bpm', W_in, x) + b_in
    if act_type == 'ReLU':
        post = jnp.maximum(pre, 0.0)
    else:
        post = jax.nn.gelu(pre, approximate=False)
    return jnp.einsum('dm,bpm->bpd', W_out, post) + b_out


if __name__ == "__main__":
    # Small module-consistent config: d_model=32, d_mlp=4*d_model=128,
    # batch=2, seq(pos)=8, act_type='ReLU'.
    B, P, D, M = 2, 8, 32, 128

    key = jax.random.PRNGKey(0)
    k1, k2, k3 = jax.random.split(key, 3)
    f32 = jnp.float32
    W_in = jax.random.normal(k1, (M, D), f32) / jnp.sqrt(D)
    b_in = jnp.zeros((M,), f32)
    W_out = jax.random.normal(k2, (D, M), f32) / jnp.sqrt(D)
    b_out = jnp.zeros((D,), f32)
    x = jax.random.normal(k3, (B, P, D), f32)

    out = mlp_forward(x, W_in, b_in, W_out, b_out, act_type='ReLU')
    out = jax.block_until_ready(out)

    ref = reference_mlp(x, W_in, b_in, W_out, b_out, act_type='ReLU')
    assert out.shape == (B, P, D)
    err = jnp.max(jnp.abs(out - ref))
    assert jnp.allclose(out, ref, atol=1e-4, rtol=1e-4), f"max abs err {err}"

    # TODO(synk): HookPoint is an identity in forward; activation hooking has no
    # in-kernel equivalent (intermediates could be emitted as extra outputs if needed).
    print("KERNEL_OK")
</pallas_src>

<mosaic_0001>
module attributes {stable_mosaic.version = 11 : i64} {
  func.func @_mlp_kernel(%arg0: i32, %arg1: memref<16x32xf32, #tpu.memory_space<vmem>>, %arg2: memref<32x128xf32, #tpu.memory_space<vmem>>, %arg3: memref<1x128xf32, #tpu.memory_space<vmem>>, %arg4: memref<128x32xf32, #tpu.memory_space<vmem>>, %arg5: memref<1x32xf32, #tpu.memory_space<vmem>>, %arg6: memref<16x32xf32, #tpu.memory_space<vmem>>) attributes {dimension_semantics = [#tpu.dimension_semantics<parallel>], iteration_bounds = array<i64: 1>, scalar_prefetch = 0 : i64, scratch_operands = 0 : i64, tpu.core_type = #tpu.core_type<tc>, window_params = [{transform_indices = @transform_0, window_bounds = array<i64: 16, 32>}, {pipeline_mode = #tpu.pipeline_mode<synchronous>, transform_indices = @transform_1, window_bounds = array<i64: 32, 128>}, {pipeline_mode = #tpu.pipeline_mode<synchronous>, transform_indices = @transform_2, window_bounds = array<i64: 1, 128>}, {pipeline_mode = #tpu.pipeline_mode<synchronous>, transform_indices = @transform_3, window_bounds = array<i64: 128, 32>}, {pipeline_mode = #tpu.pipeline_mode<synchronous>, transform_indices = @transform_4, window_bounds = array<i64: 1, 32>}, {transform_indices = @transform_5, window_bounds = array<i64: 16, 32>}]} {
    %c0 = arith.constant 0 : index
    %c0_0 = arith.constant 0 : index
    %0 = vector.load %arg1[%c0, %c0_0] : memref<16x32xf32, #tpu.memory_space<vmem>>, vector<16x32xf32>
    %c0_1 = arith.constant 0 : index
    %c0_2 = arith.constant 0 : index
    %1 = vector.load %arg2[%c0_1, %c0_2] : memref<32x128xf32, #tpu.memory_space<vmem>>, vector<32x128xf32>
    %c0_3 = arith.constant 0 : index
    %c0_4 = arith.constant 0 : index
    %2 = vector.load %arg4[%c0_3, %c0_4] : memref<128x32xf32, #tpu.memory_space<vmem>>, vector<128x32xf32>
    %cst = arith.constant dense<0.000000e+00> : vector<16x128xf32>
    %3 = tpu.matmul %0, %1, %cst {dimension_numbers = #tpu.dot_dimension_numbers<[1], [0], [0], [1], [0, 0, 1, 1], [], []>} : vector<16x32xf32>, vector<32x128xf32>, vector<16x128xf32> -> vector<16x128xf32>
    %c0_5 = arith.constant 0 : index
    %c0_6 = arith.constant 0 : index
    %4 = vector.load %arg3[%c0_5, %c0_6] : memref<1x128xf32, #tpu.memory_space<vmem>>, vector<1x128xf32>
    %5 = vector.broadcast %4 : vector<1x128xf32> to vector<16x128xf32>
    %6 = arith.addf %3, %5 : vector<16x128xf32>
    %cst_7 = arith.constant 0.000000e+00 : f32
    %7 = vector.broadcast %cst_7 : f32 to vector<16x128xf32>
    %8 = arith.maximumf %6, %7 : vector<16x128xf32>
    %cst_8 = arith.constant dense<0.000000e+00> : vector<16x32xf32>
    %9 = tpu.matmul %8, %2, %cst_8 {dimension_numbers = #tpu.dot_dimension_numbers<[1], [0], [0], [1], [0, 0, 1, 1], [], []>} : vector<16x128xf32>, vector<128x32xf32>, vector<16x32xf32> -> vector<16x32xf32>
    %c0_9 = arith.constant 0 : index
    %c0_10 = arith.constant 0 : index
    %10 = vector.load %arg5[%c0_9, %c0_10] : memref<1x32xf32, #tpu.memory_space<vmem>>, vector<1x32xf32>
    %11 = vector.broadcast %10 : vector<1x32xf32> to vector<16x32xf32>
    %12 = arith.addf %9, %11 : vector<16x32xf32>
    %c0_11 = arith.constant 0 : index
    %c0_12 = arith.constant 0 : index
    %13 = vector.load %arg6[%c0_11, %c0_12] : memref<16x32xf32, #tpu.memory_space<vmem>>, vector<16x32xf32>
    tpu.vector_store %arg6[%c0_11, %c0_12], %12 {strides = array<i32>} : memref<16x32xf32, #tpu.memory_space<vmem>>, vector<16x32xf32>,
    return
  }
  func.func @transform_0(%arg0: i32) -> (i32, i32) {
    %c0_i32 = arith.constant 0 : i32
    %c0_i32_0 = arith.constant 0 : i32
    return %arg0, %c0_i32 : i32, i32
  }
  func.func @transform_1(%arg0: i32) -> (i32, i32) {
    %c0_i32 = arith.constant 0 : i32
    %c0_i32_0 = arith.constant 0 : i32
    %c0_i32_1 = arith.constant 0 : i32
    return %c0_i32, %c0_i32_0 : i32, i32
  }
  func.func @transform_2(%arg0: i32) -> (i32, i32) {
    %c0_i32 = arith.constant 0 : i32
    %c0_i32_0 = arith.constant 0 : i32
    %c0_i32_1 = arith.constant 0 : i32
    return %c0_i32, %c0_i32_0 : i32, i32
  }
  func.func @transform_3(%arg0: i32) -> (i32, i32) {
    %c0_i32 = arith.constant 0 : i32
    %c0_i32_0 = arith.constant 0 : i32
    %c0_i32_1 = arith.constant 0 : i32
    return %c0_i32, %c0_i32_0 : i32, i32
  }
  func.func @transform_4(%arg0: i32) -> (i32, i32) {
    %c0_i32 = arith.constant 0 : i32
    %c0_i32_0 = arith.constant 0 : i32
    %c0_i32_1 = arith.constant 0 : i32
    return %c0_i32, %c0_i32_0 : i32, i32
  }
  func.func @transform_5(%arg0: i32) -> (i32, i32) {
    %c0_i32 = arith.constant 0 : i32
    %c0_i32_0 = arith.constant 0 : i32
    return %arg0, %c0_i32 : i32, i32
  }
}

</mosaic_0001>

<bundles_post_ra>
// kernel: tpu_custom_call.1
= control target key start
LH: loop header
LB: loop body
LE: loop exit
PB: predicated region body
PF: predicated region fallthrough
CT: control target
= control target key end

     0   :  { %vm50_vm0 = vcmask 261120   ;;  %s496_s0 = inlined_call_operand.vmem [shape: f32[16,32], index: 0, kind: input, shape index: {}]   ;;  %s497_s1 = inlined_call_operand.vmem [shape: f32[32,128], index: 1, kind: input, shape index: {}]   ;;  %s498_s2 = inlined_call_operand.vmem [shape: f32[1,128], index: 2, kind: input, shape index: {}]   ;;  %s499_s3 = inlined_call_operand.vmem [shape: f32[128,32], index: 3, kind: input, shape index: {}]   ;;  %s500_s4 = inlined_call_operand.vmem [shape: f32[1,32], index: 4, kind: input, shape index: {}]   ;;  %s501_s5 = inlined_call_operand.hbm [shape: f32[16,32], index: 5, kind: output, shape index: {}]  }
   0x1   :  { %v23_v0 = vld [vmem:[%s497_s1] sm:$0xff]  ;;  %v24_v1 = vld [vmem:[%s497_s1 + $0x8] sm:$0xff]  ;;  %v25_v2 = vld [vmem:[%s497_s1 + $0x10] sm:$0xff] }
   0x2   :  { %v308_v3 = vpack.c.bf16 %v24_v1, %v23_v0  ;;  %v26_v4 = vld [vmem:[%s497_s1 + $0x18] sm:$0xff]  ;;  %v21_v5 = vld [vmem:[%s496_s0] sm:$0xff]  ;;  %v28_v8 = vld [vmem:[%s499_s3 + $0x8] sm:$0xff] }
   0x3   :  { %v312_v6 = vpack.c.bf16 %v26_v4, %v25_v2  ;;  %270 = vmatprep.mubr.msk.f32.mxu0 %vm50_vm0, %v21_v5  ;;  %v27_v7 = vld [vmem:[%s499_s3] sm:$0xff]  ;;  %v29_v9 = vld [vmem:[%s499_s3 + $0x10] sm:$0xff]  ;;  %v30_v11 = vld [vmem:[%s499_s3 + $0x18] sm:$0xff] }
   0x4   :  { %309 = vmatprep.subr.bf16.mxu0 %v308_v3  ;;  %v316_v10 = vpack.c.bf16 %v28_v8, %v27_v7  ;;  %v320_v12 = vpack.c.bf16 %v30_v11, %v29_v9  ;;  %v31_v13 = vld [vmem:[%s499_s3 + $0x20] sm:$0xff]  ;;  %v32_v14 = vld [vmem:[%s499_s3 + $0x28] sm:$0xff] }
   0x5   :  { %311 = vmatpush3.bf16.msra.mxu0 %v308_v3 }
   0x6   :  { %313 = vmatprep.subr.bf16.mxu0 %v312_v6  ;;  %317 = vmatprep.subr.bf16.mxu1 %v316_v10 }
   0x7   :  { %319 = vmatpush3.bf16.msra.mxu1 %v316_v10 }
   0x8   :  { %10 = vsyncpa [#allocation3], 0  ;;  %321 = vmatprep.subr.bf16.mxu1 %v320_v12  ;;  %v324_v15 = vpack.c.bf16 %v32_v14, %v31_v13  ;;  %v22_v16 = vld [vmem:[%s496_s0 + $0x8] sm:$0xff]  ;;  %v33_v17 = vld [vmem:[%s499_s3 + $0x30] sm:$0xff] }
   0x9   :  { %315 = vmatpush3.bf16.msra.mxu0 %v312_v6  ;;  %v34_v18 = vld [vmem:[%s499_s3 + $0x38] sm:$0xff]  ;;  %v35_v20 = vld [vmem:[%s499_s3 + $0x40] sm:$0xff]  ;;  %v36_v21 = vld [vmem:[%s499_s3 + $0x48] sm:$0xff] }
   0xa   :  { %v328_v19 = vpack.c.bf16 %v34_v18, %v33_v17  ;;  %v332_v22 = vpack.c.bf16 %v36_v21, %v35_v20  ;;  %v37_v23 = vld [vmem:[%s499_s3 + $0x50] sm:$0xff]  ;;  %v38_v24 = vld [vmem:[%s499_s3 + $0x58] sm:$0xff]  ;;  %v39_v26 = vld [vmem:[%s499_s3 + $0x60] sm:$0xff] }
   0xb   :  { %323 = vmatpush3.bf16.msra.mxu1 %v320_v12  ;;  %v336_v25 = vpack.c.bf16 %v38_v24, %v37_v23  ;;  %v40_v27 = vld [vmem:[%s499_s3 + $0x68] sm:$0xff]  ;;  %v41_v29 = vld [vmem:[%s499_s3 + $0x70] sm:$0xff]  ;;  %v42_v30 = vld [vmem:[%s499_s3 + $0x78] sm:$0xff]  ;;  %s375_s3 = smov [#allocation2]  }
   0xc   :  { %271 = vmatmul.mubr.msk.f32.vlgmr.msra.gmra.mrb[0].mxu0 %vm50_vm0, %v22_v16  ;;  %325 = vmatprep.subr.bf16.mxu1 %v324_v15  ;;  %v340_v28 = vpack.c.bf16 %v40_v27, %v39_v26  ;;  %v344_v31 = vpack.c.bf16 %v42_v30, %v41_v29  ;;  %v234_v32 = vld [vmem:[%s498_s2] ss:$0 sm:$0xff]  ;;  %s223_s13 = sshll.u32 %s375_s3, 4  ;;  %s224_s13 = int_to_ptr.vmem [resolvable:$true] %s223_s13 }
   0xd   :  { %v237_v39 = vld [vmem:[%s500_s4] ss:$0 sm:$0xff]  ;;  %s351_s2 = scalar_lea.vmem %s224_s13, 256  ;;  %p356_p1 = scmp.lt.s32.totalorder %s224_s13, %s224_s13 }
   0xe   :  { %p352_p0 = scmp.ne.s32.totalorder %s224_s13, %s351_s2  ;;  %p357_p2 = scmp.lt.s32.totalorder %s351_s2, %s351_s2 }
   0xf   :  { %327 = vmatpush3.bf16.msra.mxu1 %v324_v15 }
  0x10   :  { %329 = vmatprep.subr.bf16.mxu1 %v328_v19  ;;  %p358_p3 = por %p357_p2, %p356_p1 }
  0x12   :  { %p359_p4 = pnand %p358_p3, %p352_p0 }
  0x13   :  { %331 = vmatpush3.bf16.msra.mxu1 %v328_v19 }
  0x14   :  { %333 = vmatprep.subr.bf16.mxu1 %v332_v22 }
  0x17   :  { %335 = vmatpush3.bf16.msra.mxu1 %v332_v22 }
  0x18   :  { %337 = vmatprep.subr.bf16.mxu1 %v336_v25 }
  0x1b   :  { %339 = vmatpush3.bf16.msra.mxu1 %v336_v25 }
  0x1c   :  { %341 = vmatprep.subr.bf16.mxu1 %v340_v28 }
  0x1f   :  { %343 = vmatpush3.bf16.msra.mxu1 %v340_v28 }
  0x20   :  { %345 = vmatprep.subr.bf16.mxu1 %v344_v31 }
  0x23   :  { %347 = vmatpush3.bf16.msra.mxu1 %v344_v31 }
  0xdf   :  { %v272_v33 = vpop.f32.mrb[0].mxu0 }
  0xe0   :  { %v129_v34 = vadd.f32 %v272_v33, %v234_v32  ;;  %v123_v35 = vpop.f32.mrb[1].mxu0 }
  0xe1   :  { %v124_v36 = vadd.f32 %v234_v32, %v123_v35 }
  0xe2   :  { %v133_v38 = vmax.f32 %v129_v34, 0.0 }
  0xe3   :  { %v132_v37 = vmax.f32 %v124_v36, 0.0 }
  0xe5   :  { %305 = vmatprep.mubr.f32.mxu1 %v132_v37 }
  0xe6   :  { %306 = vmatmul.mubr.f32.vlgmr.msra.gmra.mrb[0].mxu1 %v133_v38 }
 0x1b9   :  { %v307_v40 = vpop.f32.mrb[0].mxu1 }
 0x1ba   :  { %v213_v41 = vadd.f32 %v307_v40, %v237_v39  ;;  %v207_v42 = vpop.f32.mrb[1].mxu1 }
 0x1bb   :  { %v208_v43 = vadd.f32 %v237_v39, %v207_v42 }
 0x1bc   :  { %217 = vst.msk [vmem:[#allocation2 + $0x8] sm:$0xff] %vm50_vm0, %v213_v41 }
 0x1bd   :  { %216 = vst.msk [vmem:[#allocation2] sm:$0xff] %vm50_vm0, %v208_v43 }
 0x1be   :  { %362 = shalt.err (!%p359_p4)
}
 0x1bf   :  { %s363_s15 = scalar_lea.hbm %s501_s5, 256 }
 0x1c0   :  { %p364_p5 = scmp.ne.s32.totalorder %s501_s5, %s363_s15  ;;  %p367_p6 = scmp.lt.u32.totalorder %s363_s15, %s501_s5 }
 0x1c2   :  { %p369_p7 = pnand %p367_p6, %p364_p5 }
 0x1c4   :  { %372 = shalt.err (!%p369_p7)
}
 0x1c5   :  { %s376_s20 = smov 128   ;;  %s377_s21 = smov 8  }
 0x1c6   :  { %229 = dma.vmem_to_hbm [thread:$0]  %s224_s13, 256, %s501_s5, [#allocation3], %s376_s20, %s376_s20, %s377_s21  }
 0x1c7   :  { %373 = dma.done.wait [#allocation3], 256  }
 0x1c8   :  { %374 = vsyncadd [#allocation3], 4294967040 }
 0x1c9   :  { %233 = vsyncpa [#allocation3], 1 }

</bundles_post_ra>
